<compile_context>
chip_gen: v7x
topology: tpu7x:2x2x1
jax: 0.10.0
libtpu: 0.0.40
codegen_flags: <defaults>
</compile_context>

<pallas_src>
import jax
import jax.numpy as jnp
from jax.experimental import pallas as pl
from jax.experimental.pallas import tpu as pltpu

_LANE = 128


def _round_up(x, n):
    return ((x + n - 1) // n) * n


def _linear_kernel(x_ref, w_ref, b_ref, o_ref):
    # x_ref: (TM, H), w_ref: (H, L), b_ref: (1, L), o_ref: (TM, L)
    acc = jnp.dot(x_ref[...], w_ref[...], preferred_element_type=jnp.float32)
    o_ref[...] = (acc + b_ref[...].astype(jnp.float32)).astype(o_ref.dtype)


def _vmem_capacity_bytes():
    """Per-TensorCore VMEM capacity, with a conservative (v7x) fallback."""
    try:
        cap = int(getattr(pltpu.get_tpu_info(), "vmem_capacity_bytes", 0))
        if cap > 0:
            return cap
    except Exception:
        pass
    return 64 << 20  # conservative default = v7x per-TC VMEM


def _plan_tiles(m, h, l, x_dtype, w_dtype, out_dtype):
    """Pick the M-row tile and a scoped-VMEM limit from physically padded sizes."""
    x_b = jnp.dtype(x_dtype).itemsize
    w_b = jnp.dtype(w_dtype).itemsize
    o_b = jnp.dtype(out_dtype).itemsize

    x_sub = max(8, 32 // x_b)          # sublane packing of activation tiles
    w_sub = max(8, 32 // w_b)
    h_lane = _round_up(h, _LANE)       # lane padding of the contracted dim
    l_lane = _round_up(l, _LANE)       # lane padding of the tiny label dim

    vmem_cap = _vmem_capacity_bytes()
    # Scoped-VMEM budget: generous on 128 MiB chips (v5e/v6e), tight on v7x.
    budget = min(int(vmem_cap * 0.6), 80 << 20)

    # Resident weight [H, L] + bias [1, L] (constant block index), padded, with
    # 2x buffering slack, plus fixed Mosaic scratch headroom.
    fixed = (2 * _round_up(h, w_sub) * l_lane * w_b
             + 2 * 8 * l_lane * w_b
             + (2 << 20))

    # Per-row bytes of a double-buffered activation tile + lane-padded output tile.
    per_row = 2 * h_lane * x_b + 2 * l_lane * o_b

    tm_cap = 1024 if vmem_cap <= (64 << 20) else 2048
    tm_max = max(x_sub, (budget - fixed) // per_row)
    tm = min(tm_cap, tm_max, _round_up(m, x_sub))
    tm = max(x_sub, (tm // x_sub) * x_sub)

    vmem_need = fixed + tm * per_row + (1 << 20)
    vmem_limit = int(min(max(vmem_need, 4 << 20),
                         max(vmem_cap - (8 << 20), 4 << 20)))
    return tm, vmem_limit


def _looks_multicore():
    """True only for chips exposing >1 TensorCore per device (v7x)."""
    try:
        kind = jax.devices()[0].device_kind.lower()
    except Exception:
        return False
    return "v7" in kind or "7x" in kind


def _dimension_semantics_candidates(grid_m):
    cands = []
    if grid_m > 1 and _looks_multicore():
        core_parallel = getattr(pltpu, "CORE_PARALLEL", None)
        if core_parallel is not None:
            cands.append((core_parallel,))
    cands.append(("parallel",))
    return cands


def bert_token_classification_head(hidden_states, weight, bias):
    """hidden_states: [B, S, H]
       weight:        [L, H]   (PyTorch nn.Linear layout)
       bias:          [L]
       returns:       [B, S, L]
    """
    B, S, H = hidden_states.shape
    L = weight.shape[0]
    M = B * S

    x2d = hidden_states.reshape(M, H)
    # One-time wrapper-side transpose of the tiny weight to [H, L]: the kernel
    # then contracts (((1,), (0,)), ((), ())) and Mosaic emits no per-step
    # XLU transpose of the RHS.
    w_t = jnp.transpose(weight)
    b2d = bias.reshape(1, L)

    tm, vmem_limit = _plan_tiles(M, H, L, x2d.dtype, w_t.dtype, hidden_states.dtype)
    grid_m = pl.cdiv(M, tm)

    x_bytes = jnp.dtype(x2d.dtype).itemsize
    o_bytes = jnp.dtype(hidden_states.dtype).itemsize
    cost = pl.CostEstimate(
        flops=2 * M * H * L,
        bytes_accessed=x_bytes * (M * H + H * L + L) + o_bytes * M * L,
        transcendentals=0,
    )

    def build(dim_sem):
        return pl.pallas_call(
            _linear_kernel,
            out_shape=jax.ShapeDtypeStruct((M, L), hidden_states.dtype),
            grid_spec=pltpu.PrefetchScalarGridSpec(
                num_scalar_prefetch=0,
                grid=(grid_m,),
                in_specs=[
                    pl.BlockSpec((tm, H), lambda i: (i, 0)),   # activation row tile
                    pl.BlockSpec((H, L), lambda i: (0, 0)),    # weight, resident
                    pl.BlockSpec((1, L), lambda i: (0, 0)),    # bias, resident
                ],
                out_specs=pl.BlockSpec((tm, L), lambda i: (i, 0)),
            ),
            compiler_params=pltpu.CompilerParams(
                dimension_semantics=dim_sem,
                vmem_limit_bytes=vmem_limit,
            ),
            cost_estimate=cost,
        )

    last_err = None
    for dim_sem in _dimension_semantics_candidates(grid_m):
        try:
            out2d = build(dim_sem)(x2d, w_t, b2d)
            # Eager call site: surface any async compile/runtime failure here so
            # the CORE_PARALLEL attempt can fall back cleanly to "parallel".
            out2d = jax.block_until_ready(out2d)
            return out2d.reshape(B, S, L)
        except Exception as e:  # pragma: no cover - fallback path
            last_err = e
    raise last_err


if __name__ == "__main__":
    # Small config consistent with the module: hidden_size=32, num_labels=4
    batch, seq, hidden, num_labels = 2, 8, 32, 4

    key = jax.random.PRNGKey(0)
    k_x, k_w, k_b = jax.random.split(key, 3)

    hidden_states = jax.random.normal(k_x, (batch, seq, hidden), dtype=jnp.float32)
    # Deterministic synthetic parameters (nn.Linear(hidden, num_labels) shapes).
    weight = jax.random.normal(k_w, (num_labels, hidden), dtype=jnp.float32) * 0.02
    bias = jax.random.normal(k_b, (num_labels,), dtype=jnp.float32) * 0.02

    out = bert_token_classification_head(hidden_states, weight, bias)
    out = jax.block_until_ready(out)

    # Reference check in plain JAX (same math as torch.nn.Linear).
    ref = jnp.einsum("bsh,lh->bsl", hidden_states, weight) + bias
    assert out.shape == (batch, seq, num_labels)
    assert jnp.allclose(out, ref, atol=1e-5, rtol=1e-5)

    print("KERNEL_OK")
</pallas_src>

<mosaic_0001>
module attributes {stable_mosaic.version = 11 : i64} {
  func.func @_linear_kernel(%arg0: i32, %arg1: memref<16x32xf32, #tpu.memory_space<vmem>>, %arg2: memref<32x4xf32, #tpu.memory_space<vmem>>, %arg3: memref<1x4xf32, #tpu.memory_space<vmem>>, %arg4: memref<16x4xf32, #tpu.memory_space<vmem>>) attributes {dimension_semantics = [#tpu.dimension_semantics<parallel>], iteration_bounds = array<i64: 1>, scalar_prefetch = 0 : i64, scratch_operands = 0 : i64, tpu.core_type = #tpu.core_type<tc>, window_params = [{transform_indices = @transform_0, window_bounds = array<i64: 16, 32>}, {pipeline_mode = #tpu.pipeline_mode<synchronous>, transform_indices = @transform_1, window_bounds = array<i64: 32, 4>}, {pipeline_mode = #tpu.pipeline_mode<synchronous>, transform_indices = @transform_2, window_bounds = array<i64: 1, 4>}, {transform_indices = @transform_3, window_bounds = array<i64: 16, 4>}]} {
    %c0 = arith.constant 0 : index
    %c0_0 = arith.constant 0 : index
    %0 = vector.load %arg1[%c0, %c0_0] : memref<16x32xf32, #tpu.memory_space<vmem>>, vector<16x32xf32>
    %c0_1 = arith.constant 0 : index
    %c0_2 = arith.constant 0 : index
    %1 = vector.load %arg2[%c0_1, %c0_2] : memref<32x4xf32, #tpu.memory_space<vmem>>, vector<32x4xf32>
    %cst = arith.constant dense<0.000000e+00> : vector<16x4xf32>
    %2 = tpu.matmul %0, %1, %cst {dimension_numbers = #tpu.dot_dimension_numbers<[1], [0], [0], [1], [0, 0, 1, 1], [], []>} : vector<16x32xf32>, vector<32x4xf32>, vector<16x4xf32> -> vector<16x4xf32>
    %c0_3 = arith.constant 0 : index
    %c0_4 = arith.constant 0 : index
    %3 = vector.load %arg3[%c0_3, %c0_4] : memref<1x4xf32, #tpu.memory_space<vmem>>, vector<1x4xf32>
    %4 = vector.broadcast %3 : vector<1x4xf32> to vector<16x4xf32>
    %5 = arith.addf %2, %4 : vector<16x4xf32>
    %c0_5 = arith.constant 0 : index
    %c0_6 = arith.constant 0 : index
    %6 = vector.load %arg4[%c0_5, %c0_6] : memref<16x4xf32, #tpu.memory_space<vmem>>, vector<16x4xf32>
    tpu.vector_store %arg4[%c0_5, %c0_6], %5 {strides = array<i32>} : memref<16x4xf32, #tpu.memory_space<vmem>>, vector<16x4xf32>,
    return
  }
  func.func @transform_0(%arg0: i32) -> (i32, i32) {
    %c0_i32 = arith.constant 0 : i32
    %c0_i32_0 = arith.constant 0 : i32
    return %arg0, %c0_i32 : i32, i32
  }
  func.func @transform_1(%arg0: i32) -> (i32, i32) {
    %c0_i32 = arith.constant 0 : i32
    %c0_i32_0 = arith.constant 0 : i32
    %c0_i32_1 = arith.constant 0 : i32
    return %c0_i32, %c0_i32_0 : i32, i32
  }
  func.func @transform_2(%arg0: i32) -> (i32, i32) {
    %c0_i32 = arith.constant 0 : i32
    %c0_i32_0 = arith.constant 0 : i32
    %c0_i32_1 = arith.constant 0 : i32
    return %c0_i32, %c0_i32_0 : i32, i32
  }
  func.func @transform_3(%arg0: i32) -> (i32, i32) {
    %c0_i32 = arith.constant 0 : i32
    %c0_i32_0 = arith.constant 0 : i32
    return %arg0, %c0_i32 : i32, i32
  }
}

</mosaic_0001>

<bundles_post_ra>
// kernel: tpu_custom_call.1
= control target key start
LH: loop header
LB: loop body
LE: loop exit
PB: predicated region body
PF: predicated region fallthrough
CT: control target
= control target key end

     0   :  { %vm27_vm0 = vcmask 261120   ;;  %vm109_vm1 = vcmask 31744   ;;  %s191_s1 = inlined_call_operand.vmem [shape: f32[32,4], index: 1, kind: input, shape index: {}]   ;;  %s192_s0 = inlined_call_operand.vmem [shape: f32[16,32], index: 0, kind: input, shape index: {}]   ;;  %s193_s2 = inlined_call_operand.vmem [shape: f32[1,4], index: 2, kind: input, shape index: {}]   ;;  %s194_s3 = inlined_call_operand.vmem [shape: f32[16,4], index: 3, kind: output, shape index: {}]  }
   0x1   :  { %v16_v0 = vld [vmem:[%s191_s1] sm:$0xff]  ;;  %v17_v1 = vld [vmem:[%s191_s1 + $0x8] sm:$0xff]  ;;  %v18_v2 = vld [vmem:[%s191_s1 + $0x10] sm:$0xff] }
   0x2   :  { %v136_v3 = vpack.c.bf16 %v17_v1, %v16_v0  ;;  %v19_v4 = vld [vmem:[%s191_s1 + $0x18] sm:$0xff]  ;;  %v14_v5 = vld [vmem:[%s192_s0] sm:$0xff]  ;;  %v15_v7 = vld [vmem:[%s192_s0 + $0x8] sm:$0xff] }
   0x3   :  { %v140_v6 = vpack.c.bf16 %v19_v4, %v18_v2  ;;  %133 = vmatprep.mubr.msk.f32.mxu0 %vm27_vm0, %v14_v5  ;;  %v116_v8 = vld [vmem:[%s193_s2] ss:$0 sm:$0xff] }
   0x4   :  { %137 = vmatprep.subr.bf16.mxu0 %v136_v3 }
   0x5   :  { %139 = vmatpush3.bf16.msra.mxu0 %v136_v3 }
   0x6   :  { %141 = vmatprep.subr.bf16.mxu0 %v140_v6 }
   0x9   :  { %143 = vmatpush3.bf16.msra.mxu0 %v140_v6 }
   0xc   :  { %134 = vmatmul.mubr.msk.f32.vlgmr.msra.gmra.mrb[0].mxu0 %vm27_vm0, %v15_v7 }
  0xdf   :  { %v135_v9 = vpop.f32.mrb[0].mxu0 }
  0xe0   :  { %v106_v10 = vadd.f32 %v135_v9, %v116_v8  ;;  %v100_v11 = vpop.f32.mrb[1].mxu0 }
  0xe1   :  { %v101_v12 = vadd.f32 %v116_v8, %v100_v11 }
  0xe2   :  { %111 = vst.msk [vmem:[%s194_s3 + $0x8] sm:$0xff] %vm109_vm1, %v106_v10 }
  0xe3   :  { %110 = vst.msk [vmem:[%s194_s3] sm:$0xff] %vm109_vm1, %v101_v12 }

</bundles_post_ra>
